<compile_context>
chip_gen: v6e
topology: v6e:2x2x1
jax: 0.10.0
libtpu: 0.0.40
codegen_flags: <defaults>
</compile_context>

<pallas_src>
import numpy as np
import jax
import jax.numpy as jnp
from jax.experimental import pallas as pl
from jax.experimental.pallas import tpu as pltpu


def _global_filter_kernel(x_ref, g_ref, br_ref, bi_ref, wr_ref, wi_ref, o_ref):
    # x_ref/o_ref: (B_TILE, H*W, C_TILE)  activations, channels on the lane axis
    # g_ref:       (2*HKp, H*W)           stacked [Re; Im] forward rfft2 operator (ortho)
    # br/bi:       (H*W,  HKp)            Hermitian-folded irfft2 operators (ortho)
    # wr/wi:       (HKp,  C_TILE)         learned filter (real / imag) for this channel tile
    g = g_ref[...]
    br = br_ref[...]
    bi = bi_ref[...]
    wr = wr_ref[...]
    wi = wi_ref[...]
    hkp = wr_ref.shape[0]
    for b in range(x_ref.shape[0]):                 # small static unroll over the batch tile
        x = x_ref[b]                                # (H*W, C_TILE)
        xf = jnp.dot(g, x, preferred_element_type=jnp.float32)     # (2*HKp, C_TILE)
        xr = xf[:hkp]                               # sublane-aligned slices (HKp % 8 == 0)
        xi = xf[hkp:]
        yr = xr * wr - xi * wi                      # complex filter, lane dim = C
        yi = xr * wi + xi * wr
        y = (jnp.dot(br, yr, preferred_element_type=jnp.float32)
             + jnp.dot(bi, yi, preferred_element_type=jnp.float32))  # (H*W, C_TILE)
        o_ref[b] = y.astype(o_ref.dtype)


def _dft_operators(h, w):
    """Stacked real rfft2 / Hermitian-folded irfft2 (ortho) operators on (h*w,)-flat signals.

    Returns g (2*hkp, h*w), br (h*w, hkp), bi (h*w, hkp), hkp, where HK = h*(w//2+1) is
    zero-padded to hkp (next multiple of 8) so in-kernel slices stay sublane-aligned.
    """
    k = w // 2 + 1
    hk, hw = h * k, h * w
    hkp = ((hk + 7) // 8) * 8
    m = np.arange(h)[:, None, None, None]
    kk = np.arange(k)[None, :, None, None]
    hh = np.arange(h)[None, None, :, None]
    ww = np.arange(w)[None, None, None, :]
    theta = 2.0 * np.pi * (m * hh / h + kk * ww / w)       # θ = 2π(mh/H + kw/W), shape (h,k,h,w)
    scale = 1.0 / np.sqrt(h * w)
    gr = (np.cos(theta) * scale).reshape(hk, hw)           # Re(rfft2)
    gi = (-np.sin(theta) * scale).reshape(hk, hw)          # Im(rfft2)
    ck = np.full((1, k, 1, 1), 2.0)                        # Hermitian fold weights
    ck[0, 0] = 1.0
    if w % 2 == 0:
        ck[0, -1] = 1.0                                    # Nyquist column not doubled
    br = np.transpose(ck * np.cos(theta) * scale, (2, 3, 0, 1)).reshape(hw, hk)
    bi = np.transpose(-ck * np.sin(theta) * scale, (2, 3, 0, 1)).reshape(hw, hk)

    g = np.zeros((2 * hkp, hw), np.float32)                # stacked + padded forward operator
    g[:hk] = gr
    g[hkp:hkp + hk] = gi
    brp = np.zeros((hw, hkp), np.float32)
    bip = np.zeros((hw, hkp), np.float32)
    brp[:, :hk] = br
    bip[:, :hk] = bi
    return g, brp, bip, hkp


def _choose_c_tile(c, hw, elem_bytes, target_bytes):
    if c % 128 != 0:
        return c                      # block dim == full dim is always legal (small/odd C)
    best, ct = 128, 128               # otherwise keep the lane tile a multiple of 128
    while ct <= c:
        if c % ct == 0 and hw * ct * elem_bytes <= target_bytes:
            best = ct
        ct += 128
    return best


def _choose_b_tile(b, per_batch_bytes, target_bytes, cap=8):
    best = 1
    for bt in range(1, min(b, cap) + 1):
        if b % bt == 0 and bt * per_batch_bytes <= target_bytes:
            best = bt
    return best


def global_filter(x, complex_weight, h, w):
    """x: (B, N, C) with N == h*w; complex_weight: (h, w//2+1, C, 2) float32."""
    B, N, C = x.shape
    assert N == h * w, (N, h, w)
    K = w // 2 + 1
    HK, HW = h * K, h * w

    g, br, bi, HKp = _dft_operators(h, w)

    # Learned filter, (h, K, C, 2) -> zero-padded (HKp, C) real / imag, channels on lanes.
    w_ri = complex_weight.reshape(HK, C, 2).astype(jnp.float32)
    pad = ((0, HKp - HK), (0, 0))
    wr = jnp.pad(w_ri[..., 0], pad)
    wi = jnp.pad(w_ri[..., 1], pad)

    elem = x.dtype.itemsize
    target = 2 * 1024 * 1024                     # ~2 MiB of activations per grid step
    Ct = _choose_c_tile(C, HW, elem, target)
    Bt = _choose_b_tile(B, HW * Ct * elem, target)
    grid = (C // Ct, B // Bt)                    # batch innermost: operator/filter blocks stay put

    out = pl.pallas_call(
        _global_filter_kernel,
        out_shape=jax.ShapeDtypeStruct((B, N, C), x.dtype),
        grid=grid,
        in_specs=[
            pl.BlockSpec((Bt, HW, Ct), lambda ci, bj: (bj, 0, ci)),    # x (lane-dense channels)
            pl.BlockSpec((2 * HKp, HW), lambda ci, bj: (0, 0)),        # stacked fwd DFT (invariant)
            pl.BlockSpec((HW, HKp), lambda ci, bj: (0, 0)),            # Br (invariant)
            pl.BlockSpec((HW, HKp), lambda ci, bj: (0, 0)),            # Bi (invariant)
            pl.BlockSpec((HKp, Ct), lambda ci, bj: (0, ci)),           # wr (per channel tile)
            pl.BlockSpec((HKp, Ct), lambda ci, bj: (0, ci)),           # wi
        ],
        out_specs=pl.BlockSpec((Bt, HW, Ct), lambda ci, bj: (bj, 0, ci)),
        compiler_params=pltpu.CompilerParams(
            dimension_semantics=("parallel", "parallel"),
            vmem_limit_bytes=48 * 1024 * 1024),
    )(x, jnp.asarray(g), jnp.asarray(br), jnp.asarray(bi), wr, wi)
    return out


def _reference(x, complex_weight, h, w):
    B, N, C = x.shape
    xn = np.asarray(x, dtype=np.float64).reshape(B, h, w, C)
    wn = np.asarray(complex_weight, dtype=np.float64)
    wc = wn[..., 0] + 1j * wn[..., 1]                         # (h, w//2+1, C)
    xf = np.fft.rfft2(xn, axes=(1, 2), norm="ortho")
    y = np.fft.irfft2(xf * wc[None], s=(h, w), axes=(1, 2), norm="ortho")
    return y.reshape(B, N, C)


if __name__ == "__main__":
    key = jax.random.PRNGKey(0)
    configs = [
        (2, 4, 8, 8),       # module defaults: dim=4, h=8, w=8 -> N=64
        (16, 4, 8, 8),      # several batch grid steps (operators/filter stay resident)
        (4, 256, 14, 14),   # lane-dense channel tile (multiple of 128), GFNet-like spatial
    ]
    for (B, C, H, W) in configs:
        key, kx, kw = jax.random.split(key, 3)
        N = H * W
        x = jax.random.normal(kx, (B, N, C), dtype=jnp.float32)
        complex_weight = 0.02 * jax.random.normal(
            kw, (H, W // 2 + 1, C, 2), dtype=jnp.float32)

        out = jax.block_until_ready(global_filter(x, complex_weight, H, W))
        ref = _reference(x, complex_weight, H, W)
        err = float(np.max(np.abs(np.asarray(out) - ref)))
        assert np.allclose(np.asarray(out), ref, rtol=2e-2, atol=5e-3), (B, C, H, W, err)
    print("KERNEL_OK")
</pallas_src>

<mosaic_0001>
module attributes {stable_mosaic.version = 11 : i64} {
  func.func @_global_filter_kernel(%arg0: i32, %arg1: i32, %arg2: memref<2x64x4xf32, #tpu.memory_space<vmem>>, %arg3: memref<80x64xf32, #tpu.memory_space<vmem>>, %arg4: memref<64x40xf32, #tpu.memory_space<vmem>>, %arg5: memref<64x40xf32, #tpu.memory_space<vmem>>, %arg6: memref<40x4xf32, #tpu.memory_space<vmem>>, %arg7: memref<40x4xf32, #tpu.memory_space<vmem>>, %arg8: memref<2x64x4xf32, #tpu.memory_space<vmem>>) attributes {dimension_semantics = [#tpu.dimension_semantics<parallel>, #tpu.dimension_semantics<parallel>], iteration_bounds = array<i64: 1, 1>, scalar_prefetch = 0 : i64, scratch_operands = 0 : i64, tpu.core_type = #tpu.core_type<tc>, window_params = [{transform_indices = @transform_0, window_bounds = array<i64: 2, 64, 4>}, {pipeline_mode = #tpu.pipeline_mode<synchronous>, transform_indices = @transform_1, window_bounds = array<i64: 80, 64>}, {pipeline_mode = #tpu.pipeline_mode<synchronous>, transform_indices = @transform_2, window_bounds = array<i64: 64, 40>}, {pipeline_mode = #tpu.pipeline_mode<synchronous>, transform_indices = @transform_3, window_bounds = array<i64: 64, 40>}, {transform_indices = @transform_4, window_bounds = array<i64: 40, 4>}, {transform_indices = @transform_5, window_bounds = array<i64: 40, 4>}, {transform_indices = @transform_6, window_bounds = array<i64: 2, 64, 4>}]} {
    %c0 = arith.constant 0 : index
    %c0_0 = arith.constant 0 : index
    %0 = vector.load %arg3[%c0, %c0_0] : memref<80x64xf32, #tpu.memory_space<vmem>>, vector<80x64xf32>
    %c0_1 = arith.constant 0 : index
    %c0_2 = arith.constant 0 : index
    %1 = vector.load %arg4[%c0_1, %c0_2] : memref<64x40xf32, #tpu.memory_space<vmem>>, vector<64x40xf32>
    %c0_3 = arith.constant 0 : index
    %c0_4 = arith.constant 0 : index
    %2 = vector.load %arg5[%c0_3, %c0_4] : memref<64x40xf32, #tpu.memory_space<vmem>>, vector<64x40xf32>
    %c0_5 = arith.constant 0 : index
    %c0_6 = arith.constant 0 : index
    %3 = vector.load %arg6[%c0_5, %c0_6] : memref<40x4xf32, #tpu.memory_space<vmem>>, vector<40x4xf32>
    %c0_7 = arith.constant 0 : index
    %c0_8 = arith.constant 0 : index
    %4 = vector.load %arg7[%c0_7, %c0_8] : memref<40x4xf32, #tpu.memory_space<vmem>>, vector<40x4xf32>
    %c0_9 = arith.constant 0 : index
    %c0_10 = arith.constant 0 : index
    %c0_11 = arith.constant 0 : index
    %5 = vector.load %arg2[%c0_9, %c0_10, %c0_11] : memref<2x64x4xf32, #tpu.memory_space<vmem>>, vector<1x64x4xf32>
    %6 = vector.shape_cast %5 : vector<1x64x4xf32> to vector<64x4xf32>
    %cst = arith.constant dense<0.000000e+00> : vector<80x4xf32>
    %7 = tpu.matmul %0, %6, %cst {dimension_numbers = #tpu.dot_dimension_numbers<[1], [0], [0], [1], [0, 0, 1, 1], [], []>} : vector<80x64xf32>, vector<64x4xf32>, vector<80x4xf32> -> vector<80x4xf32>
    %8 = vector.extract_strided_slice %7 {offsets = [0, 0], sizes = [40, 4], strides = [1, 1]} : vector<80x4xf32> to vector<40x4xf32>
    %9 = vector.extract_strided_slice %7 {offsets = [40, 0], sizes = [40, 4], strides = [1, 1]} : vector<80x4xf32> to vector<40x4xf32>
    %10 = arith.mulf %8, %3 : vector<40x4xf32>
    %11 = arith.mulf %9, %4 : vector<40x4xf32>
    %12 = arith.subf %10, %11 : vector<40x4xf32>
    %13 = arith.mulf %8, %4 : vector<40x4xf32>
    %14 = arith.mulf %9, %3 : vector<40x4xf32>
    %15 = arith.addf %13, %14 : vector<40x4xf32>
    %cst_12 = arith.constant dense<0.000000e+00> : vector<64x4xf32>
    %16 = tpu.matmul %1, %12, %cst_12 {dimension_numbers = #tpu.dot_dimension_numbers<[1], [0], [0], [1], [0, 0, 1, 1], [], []>} : vector<64x40xf32>, vector<40x4xf32>, vector<64x4xf32> -> vector<64x4xf32>
    %cst_13 = arith.constant dense<0.000000e+00> : vector<64x4xf32>
    %17 = tpu.matmul %2, %15, %cst_13 {dimension_numbers = #tpu.dot_dimension_numbers<[1], [0], [0], [1], [0, 0, 1, 1], [], []>} : vector<64x40xf32>, vector<40x4xf32>, vector<64x4xf32> -> vector<64x4xf32>
    %18 = arith.addf %16, %17 : vector<64x4xf32>
    %c0_14 = arith.constant 0 : index
    %c0_15 = arith.constant 0 : index
    %c0_16 = arith.constant 0 : index
    %19 = vector.load %arg8[%c0_14, %c0_15, %c0_16] : memref<2x64x4xf32, #tpu.memory_space<vmem>>, vector<1x64x4xf32>
    %20 = vector.shape_cast %19 : vector<1x64x4xf32> to vector<64x4xf32>
    %21 = vector.shape_cast %18 : vector<64x4xf32> to vector<1x64x4xf32>
    tpu.vector_store %arg8[%c0_14, %c0_15, %c0_16], %21 {strides = array<i32>} : memref<2x64x4xf32, #tpu.memory_space<vmem>>, vector<1x64x4xf32>,
    %c1 = arith.constant 1 : index
    %c0_17 = arith.constant 0 : index
    %c0_18 = arith.constant 0 : index
    %22 = vector.load %arg2[%c1, %c0_17, %c0_18] : memref<2x64x4xf32, #tpu.memory_space<vmem>>, vector<1x64x4xf32>
    %23 = vector.shape_cast %22 : vector<1x64x4xf32> to vector<64x4xf32>
    %cst_19 = arith.constant dense<0.000000e+00> : vector<80x4xf32>
    %24 = tpu.matmul %0, %23, %cst_19 {dimension_numbers = #tpu.dot_dimension_numbers<[1], [0], [0], [1], [0, 0, 1, 1], [], []>} : vector<80x64xf32>, vector<64x4xf32>, vector<80x4xf32> -> vector<80x4xf32>
    %25 = vector.extract_strided_slice %24 {offsets = [0, 0], sizes = [40, 4], strides = [1, 1]} : vector<80x4xf32> to vector<40x4xf32>
    %26 = vector.extract_strided_slice %24 {offsets = [40, 0], sizes = [40, 4], strides = [1, 1]} : vector<80x4xf32> to vector<40x4xf32>
    %27 = arith.mulf %25, %3 : vector<40x4xf32>
    %28 = arith.mulf %26, %4 : vector<40x4xf32>
    %29 = arith.subf %27, %28 : vector<40x4xf32>
    %30 = arith.mulf %25, %4 : vector<40x4xf32>
    %31 = arith.mulf %26, %3 : vector<40x4xf32>
    %32 = arith.addf %30, %31 : vector<40x4xf32>
    %cst_20 = arith.constant dense<0.000000e+00> : vector<64x4xf32>
    %33 = tpu.matmul %1, %29, %cst_20 {dimension_numbers = #tpu.dot_dimension_numbers<[1], [0], [0], [1], [0, 0, 1, 1], [], []>} : vector<64x40xf32>, vector<40x4xf32>, vector<64x4xf32> -> vector<64x4xf32>
    %cst_21 = arith.constant dense<0.000000e+00> : vector<64x4xf32>
    %34 = tpu.matmul %2, %32, %cst_21 {dimension_numbers = #tpu.dot_dimension_numbers<[1], [0], [0], [1], [0, 0, 1, 1], [], []>} : vector<64x40xf32>, vector<40x4xf32>, vector<64x4xf32> -> vector<64x4xf32>
    %35 = arith.addf %33, %34 : vector<64x4xf32>
    %c1_22 = arith.constant 1 : index
    %c0_23 = arith.constant 0 : index
    %c0_24 = arith.constant 0 : index
    %36 = vector.load %arg8[%c1_22, %c0_23, %c0_24] : memref<2x64x4xf32, #tpu.memory_space<vmem>>, vector<1x64x4xf32>
    %37 = vector.shape_cast %36 : vector<1x64x4xf32> to vector<64x4xf32>
    %38 = vector.shape_cast %35 : vector<64x4xf32> to vector<1x64x4xf32>
    tpu.vector_store %arg8[%c1_22, %c0_23, %c0_24], %38 {strides = array<i32>} : memref<2x64x4xf32, #tpu.memory_space<vmem>>, vector<1x64x4xf32>,
    return
  }
  func.func @transform_0(%arg0: i32, %arg1: i32) -> (i32, i32, i32) {
    %c0_i32 = arith.constant 0 : i32
    %c0_i32_0 = arith.constant 0 : i32
    return %arg1, %c0_i32, %arg0 : i32, i32, i32
  }
  func.func @transform_1(%arg0: i32, %arg1: i32) -> (i32, i32) {
    %c0_i32 = arith.constant 0 : i32
    %c0_i32_0 = arith.constant 0 : i32
    %c0_i32_1 = arith.constant 0 : i32
    return %c0_i32, %c0_i32_0 : i32, i32
  }
  func.func @transform_2(%arg0: i32, %arg1: i32) -> (i32, i32) {
    %c0_i32 = arith.constant 0 : i32
    %c0_i32_0 = arith.constant 0 : i32
    %c0_i32_1 = arith.constant 0 : i32
    return %c0_i32, %c0_i32_0 : i32, i32
  }
  func.func @transform_3(%arg0: i32, %arg1: i32) -> (i32, i32) {
    %c0_i32 = arith.constant 0 : i32
    %c0_i32_0 = arith.constant 0 : i32
    %c0_i32_1 = arith.constant 0 : i32
    return %c0_i32, %c0_i32_0 : i32, i32
  }
  func.func @transform_4(%arg0: i32, %arg1: i32) -> (i32, i32) {
    %c0_i32 = arith.constant 0 : i32
    %c0_i32_0 = arith.constant 0 : i32
    return %c0_i32, %arg0 : i32, i32
  }
  func.func @transform_5(%arg0: i32, %arg1: i32) -> (i32, i32) {
    %c0_i32 = arith.constant 0 : i32
    %c0_i32_0 = arith.constant 0 : i32
    return %c0_i32, %arg0 : i32, i32
  }
  func.func @transform_6(%arg0: i32, %arg1: i32) -> (i32, i32, i32) {
    %c0_i32 = arith.constant 0 : i32
    %c0_i32_0 = arith.constant 0 : i32
    return %arg1, %c0_i32, %arg0 : i32, i32, i32
  }
}

</mosaic_0001>

<bundles_post_ra>
// kernel: tpu_custom_call.1
= control target key start
LH: loop header
LB: loop body
LE: loop exit
PB: predicated region body
PF: predicated region fallthrough
CT: control target
= control target key end

     0   :  { %vm67_vm0 = vcmask 523264   ;;  %vm243_vm1 = vcmask 326656   ;;  %vm502_vm2 = vcmask 31744   ;;  %s1713_s0 = inlined_call_operand.vmem [shape: f32[2,64,4], index: 0, kind: input, shape index: {}]   ;;  %s1714_s1 = inlined_call_operand.vmem [shape: f32[80,64], index: 1, kind: input, shape index: {}]   ;;  %s1715_s3 = inlined_call_operand.vmem [shape: f32[64,40], index: 3, kind: input, shape index: {}]   ;;  %s1716_s2 = inlined_call_operand.vmem [shape: f32[64,40], index: 2, kind: input, shape index: {}]   ;;  %s1717_s5 = inlined_call_operand.vmem [shape: f32[40,4], index: 5, kind: input, shape index: {}]   ;;  %s1718_s4 = inlined_call_operand.vmem [shape: f32[40,4], index: 4, kind: input, shape index: {}]   ;;  %s1719_s6 = inlined_call_operand.vmem [shape: f32[2,64,4], index: 6, kind: output, shape index: {}]  }
   0x1   :  { %v66_v0 = vld [vmem:[%s1713_s0 + $0x38] sm:$0xff]  ;;  %v65_v1 = vld [vmem:[%s1713_s0 + $0x30] sm:$0xff]  ;;  %v64_v2 = vld [vmem:[%s1713_s0 + $0x28] sm:$0xff] }
   0x2   :  { %1044 = vmatprep.subr.mxu0 %v66_v0  ;;  %v23_v3 = vld [vmem:[%s1714_s1] sm:$0xff]  ;;  %v62_v5 = vld [vmem:[%s1713_s0 + $0x18] sm:$0xff]  ;;  %v61_v6 = vld [vmem:[%s1713_s0 + $0x10] sm:$0xff] }
   0x3   :  { %1045 = vmatpush3.msra.mxu0 %v66_v0  ;;  %1060 = vmatprep.mubr.msk.f32.mxu0 %vm67_vm0, %v23_v3  ;;  %v63_v4 = vld [vmem:[%s1713_s0 + $0x20] sm:$0xff]  ;;  %v60_v7 = vld [vmem:[%s1713_s0 + $0x8] sm:$0xff]  ;;  %v25_v10 = vld [vmem:[%s1714_s1 + $0x10] sm:$0xff] }
   0x4   :  { %1046 = vmatprep.subr.mxu0 %v65_v1  ;;  %v59_v8 = vld [vmem:[%s1713_s0] sm:$0xff]  ;;  %v24_v9 = vld [vmem:[%s1714_s1 + $0x8] sm:$0xff]  ;;  %v26_v11 = vld [vmem:[%s1714_s1 + $0x18] sm:$0xff] }
   0x5   :  { %1047 = vmatpush3.msra.mxu0 %v65_v1  ;;  %v27_v12 = vld [vmem:[%s1714_s1 + $0x20] sm:$0xff]  ;;  %v28_v13 = vld [vmem:[%s1714_s1 + $0x28] sm:$0xff]  ;;  %v1295_v14 = vld [vmem:[%s1714_s1 + $0x30] sm:$0xff] }
   0x6   :  { %1048 = vmatprep.subr.mxu0 %v64_v2  ;;  %v1303_v15 = vld [vmem:[%s1714_s1 + $0x38] sm:$0xff]  ;;  %v1308_v16 = vld [vmem:[%s1714_s1 + $0x40] sm:$0xff]  ;;  %v1317_v17 = vld [vmem:[%s1714_s1 + $0x48] sm:$0xff] }
   0x7   :  { %1049 = vmatpush3.msra.mxu0 %v64_v2  ;;  %v1325_v18 = vld [vmem:[%s1715_s3] sm:$0xff]  ;;  %v1332_v19 = vld [vmem:[%s1713_s0 + $0x78] sm:$0xff]  ;;  %v1339_v20 = vld [vmem:[%s1713_s0 + $0x70] sm:$0xff] }
   0x8   :  { %1050 = vmatprep.subr.mxu0 %v63_v4  ;;  %1085 = vmatprep.mubr.msk.f32.mxu1 %vm243_vm1, %v1325_v18  ;;  %v1346_v21 = vld [vmem:[%s1713_s0 + $0x68] sm:$0xff]  ;;  %v1353_v22 = vld [vmem:[%s1713_s0 + $0x60] sm:$0xff]  ;;  %v1360_v23 = vld [vmem:[%s1713_s0 + $0x58] sm:$0xff] }
   0x9   :  { %1051 = vmatpush3.msra.mxu0 %v63_v4  ;;  %v1367_v24 = vld [vmem:[%s1713_s0 + $0x50] sm:$0xff]  ;;  %v1373_v25 = vld [vmem:[%s1713_s0 + $0x48] sm:$0xff]  ;;  %v1381_v26 = vld [vmem:[%s1713_s0 + $0x40] sm:$0xff] }
   0xa   :  { %1052 = vmatprep.subr.mxu0 %v62_v5  ;;  %v1392_v27 = vld [vmem:[%s1716_s2] sm:$0xff]  ;;  %v1409_v37 = vld [vmem:[%s1717_s5 + $0x18] sm:$0xff]  ;;  %v1426_v43 = vld [vmem:[%s1718_s4 + $0x10] sm:$0xff] }
   0xb   :  { %1053 = vmatpush3.msra.mxu0 %v62_v5  ;;  %v1404_v35 = vld [vmem:[%s1717_s5 + $0x20] sm:$0xff]  ;;  %v1421_v42 = vld [vmem:[%s1718_s4 + $0x18] sm:$0xff]  ;;  %v1431_v44 = vld [vmem:[%s1717_s5 + $0x10] sm:$0xff] }
   0xc   :  { %1054 = vmatprep.subr.mxu0 %v61_v6  ;;  %v1414_v38 = vld [vmem:[%s1718_s4 + $0x20] sm:$0xff]  ;;  %v1439_v50 = vld [vmem:[%s1718_s4 + $0x8] sm:$0xff] }
   0xd   :  { %1055 = vmatpush3.msra.mxu0 %v61_v6  ;;  %v1444_v51 = vld [vmem:[%s1717_s5 + $0x8] sm:$0xff]  ;;  %v1451_v55 = vld [vmem:[%s1718_s4] sm:$0xff]  ;;  %v1476_v6 = vld [vmem:[%s1715_s3 + $0x10] sm:$0xff] }
   0xe   :  { %1056 = vmatprep.subr.mxu0 %v60_v7  ;;  %v1456_v56 = vld [vmem:[%s1717_s5] sm:$0xff]  ;;  %v1469_v2 = vld [vmem:[%s1715_s3 + $0x8] sm:$0xff] }
   0xf   :  { %1057 = vmatpush3.msra.mxu0 %v60_v7 }
  0x10   :  { %1058 = vmatprep.subr.mxu0 %v59_v8 }
  0x11   :  { %1059 = vmatpush3.msra.mxu0 %v59_v8 }
  0x12   :  { %1061 = vmatmul.mubr.msk.f32.vlgmr.msra.gmra.mxu0 %vm67_vm0, %v24_v9  ;;  %1119 = vmatprep.subr.mxu0 %v1332_v19 }
  0x13   :  { %1063 = vmatprep.mubr.msk.f32.mxu0 %vm67_vm0, %v25_v10  ;;  %1120 = vmatpush3.msra.mxu0 %v1332_v19 }
  0x14   :  { %1121 = vmatprep.subr.mxu0 %v1339_v20 }
  0x15   :  { %1122 = vmatpush3.msra.mxu0 %v1339_v20 }
  0x16   :  { %1064 = vmatmul.mubr.msk.f32.gmra.mxu0 %vm67_vm0, %v26_v11  ;;  %1123 = vmatprep.subr.mxu0 %v1346_v21 }
  0x17   :  { %1066 = vmatprep.mubr.msk.f32.mxu0 %vm67_vm0, %v27_v12  ;;  %1124 = vmatpush3.msra.mxu0 %v1346_v21 }
  0x18   :  { %1125 = vmatprep.subr.mxu0 %v1353_v22 }
  0x19   :  { %1126 = vmatpush3.msra.mxu0 %v1353_v22 }
  0x1a   :  { %1067 = vmatmul.mubr.msk.f32.gmra.mxu0 %vm67_vm0, %v28_v13  ;;  %1127 = vmatprep.subr.mxu0 %v1360_v23 }
  0x1b   :  { %1069 = vmatprep.mubr.msk.f32.mxu0 %vm67_vm0, %v1295_v14  ;;  %1128 = vmatpush3.msra.mxu0 %v1360_v23 }
  0x1c   :  { %1129 = vmatprep.subr.mxu0 %v1367_v24 }
  0x1d   :  { %1130 = vmatpush3.msra.mxu0 %v1367_v24 }
  0x1e   :  { %1070 = vmatmul.mubr.msk.f32.gmra.mxu0 %vm67_vm0, %v1303_v15  ;;  %1131 = vmatprep.subr.mxu0 %v1373_v25 }
  0x1f   :  { %1072 = vmatprep.mubr.msk.f32.mxu0 %vm67_vm0, %v1308_v16  ;;  %1132 = vmatpush3.msra.mxu0 %v1373_v25 }
  0x20   :  { %1133 = vmatprep.subr.mxu0 %v1381_v26 }
  0x21   :  { %1134 = vmatpush3.msra.mxu0 %v1381_v26 }
  0x22   :  { %1073 = vmatmul.mubr.msk.f32.gmra.mxu0 %vm67_vm0, %v1317_v17 }
  0x23   :  { %1135 = vmatprep.mubr.msk.f32.mxu0 %vm67_vm0, %v23_v3 }
  0x26   :  { %1136 = vmatmul.mubr.msk.f32.vlgmr.msra.gmra.mxu0 %vm67_vm0, %v24_v9 }
  0x27   :  { %1138 = vmatprep.mubr.msk.f32.mxu0 %vm67_vm0, %v25_v10  ;;  %v1487_v10 = vld [vmem:[%s1715_s3 + $0x18] sm:$0xff] }
  0x2a   :  { %1139 = vmatmul.mubr.msk.f32.gmra.mxu0 %vm67_vm0, %v26_v11 }
  0x2b   :  { %1141 = vmatprep.mubr.msk.f32.mxu0 %vm67_vm0, %v27_v12 }
  0x2e   :  { %1142 = vmatmul.mubr.msk.f32.gmra.mxu0 %vm67_vm0, %v28_v13 }
  0x2f   :  { %1182 = vmatprep.mubr.msk.f32.mxu0 %vm243_vm1, %v1392_v27 }
  0xd2   :  { %v1397_v28 = vpop.f32.mrf.mxu0 }
  0xd3   :  { %v229_v57 = vmul.f32 %v1397_v28, %v1444_v51  ;;  %v214_v11 = vmul.f32 %v1397_v28, %v1439_v50  ;;  %v1506_v28 = vld [vmem:[%s1715_s3 + $0x28] sm:$0xff] }
  0xd4   :  { %v1399_v29 = vpop.f32.mrf.mxu0 }
  0xd5   :  { %v228_v60 = vmul.f32 %v1399_v29, %v1456_v56 }
  0xd6   :  { %v1065_v30 = vpop.f32.mrf.mxu0 }
  0xd7   :  { %v231_v46 = vmul.f32 %v1065_v30, %v1409_v37  ;;  %v216_v3 = vmul.f32 %v1065_v30, %v1421_v42  ;;  %v1495_v30 = vld [vmem:[%s1715_s3 + $0x20] sm:$0xff] }
  0xd8   :  { %v174_v31 = vpop.f32.mrf.mxu0 }
  0xd9   :  { %v230_v52 = vmul.f32 %v174_v31, %v1431_v44  ;;  %v215_v7 = vmul.f32 %v174_v31, %v1426_v43  ;;  %v213_v31 = vmul.f32 %v1399_v29, %v1451_v55  ;;  %v1511_v29 = vld [vmem:[%s1715_s3 + $0x30] sm:$0xff] }
  0xda   :  { %v1068_v32 = vpop.f32.mrf.mxu0 }
  0xdb   :  { %v233_v58 = vmul.f32 %v1068_v32, %v1451_v55  ;;  %v218_v12 = vmul.f32 %v1068_v32, %v1456_v56 }
  0xdc   :  { %v184_v33 = vpop.f32.mrf.mxu0 }
  0xdd   :  { %v232_v40 = vmul.f32 %v184_v33, %v1404_v35  ;;  %v238_v63 = vadd.f32 %v233_v58, %v228_v60  ;;  %v217_v0 = vmul.f32 %v184_v33, %v1414_v38  ;;  %v223_v32 = vsub.f32 %v213_v31, %v218_v12 }
  0xde   :  { %v1071_v34 = vpop.f32.mrf.mxu0 }
  0xdf   :  { %v235_v47 = vmul.f32 %v1071_v34, %v1426_v43  ;;  %v220_v4 = vmul.f32 %v1071_v34, %v1431_v44  ;;  %v1520_v34 = vld [vmem:[%s1715_s3 + $0x38] sm:$0xff] }
  0xe0   :  { %v194_v36 = vpop.f32.mrf.mxu0 }
  0xe1   :  { %v234_v53 = vmul.f32 %v194_v36, %v1439_v50  ;;  %v240_v59 = vadd.f32 %v235_v47, %v230_v52  ;;  %v219_v8 = vmul.f32 %v194_v36, %v1444_v51  ;;  %v225_v13 = vsub.f32 %v215_v7, %v220_v4  ;;  %v1530_v36 = vld [vmem:[%s1716_s2 + $0x8] sm:$0xff] }
  0xe2   :  { %v1074_v39 = vpop.f32.mrf.mxu0 }
  0xe3   :  { %v237_v41 = vmul.f32 %v1074_v39, %v1414_v38  ;;  %v239_v61 = vadd.f32 %v234_v53, %v229_v57  ;;  %v222_v62 = vmul.f32 %v1074_v39, %v1404_v35  ;;  %v224_v33 = vsub.f32 %v214_v11, %v219_v8  ;;  %v1535_v39 = vld [vmem:[%s1716_s2 + $0x10] sm:$0xff] }
  0xe4   :  { %v204_v45 = vpop.f32.mrf.mxu0 }
  0xe5   :  { %v236_v48 = vmul.f32 %v204_v45, %v1421_v42  ;;  %v242_v49 = vadd.f32 %v237_v41, %v232_v40  ;;  %v221_v1 = vmul.f32 %v204_v45, %v1409_v37  ;;  %v227_v5 = vsub.f32 %v217_v0, %v222_v62  ;;  %v1551_v40 = vld [vmem:[%s1716_s2 + $0x20] sm:$0xff] }
  0xe7   :  { %v241_v54 = vadd.f32 %v236_v48, %v231_v46  ;;  %1075 = vmatprep.subr.mxu1 %v242_v49  ;;  %v226_v9 = vsub.f32 %v216_v3, %v221_v1 }
  0xe8   :  { %1076 = vmatpush3.msra.mxu1 %v242_v49 }
  0xe9   :  { %1077 = vmatprep.subr.mxu1 %v241_v54 }
  0xea   :  { %1078 = vmatpush3.msra.mxu1 %v241_v54 }
  0xeb   :  { %1079 = vmatprep.subr.mxu1 %v240_v59 }
  0xec   :  { %1080 = vmatpush3.msra.mxu1 %v240_v59 }
  0xed   :  { %1081 = vmatprep.subr.mxu1 %v239_v61 }
  0xee   :  { %1082 = vmatpush3.msra.mxu1 %v239_v61 }
  0xef   :  { %1083 = vmatprep.subr.mxu1 %v238_v63 }
  0xf0   :  { %1084 = vmatpush3.msra.mxu1 %v238_v63 }
  0xf1   :  { %1086 = vmatmul.mubr.msk.f32.vlgmr.msra.gmra.mxu1 %vm243_vm1, %v1469_v2  ;;  %1097 = vmatprep.subr.mxu1 %v227_v5 }
  0xf2   :  { %1098 = vmatpush3.msra.mxu1 %v227_v5  ;;  %1088 = vmatprep.mubr.msk.f32.mxu1 %vm243_vm1, %v1476_v6 }
  0xf3   :  { %1099 = vmatprep.subr.mxu1 %v226_v9 }
  0xf4   :  { %1100 = vmatpush3.msra.mxu1 %v226_v9 }
  0xf5   :  { %1089 = vmatmul.mubr.msk.f32.gmra.mxu1 %vm243_vm1, %v1487_v10  ;;  %1101 = vmatprep.subr.mxu1 %v225_v13 }
  0xf6   :  { %1102 = vmatpush3.msra.mxu1 %v225_v13  ;;  %1091 = vmatprep.mubr.msk.f32.mxu1 %vm243_vm1, %v1495_v30 }
  0xf7   :  { %1103 = vmatprep.subr.mxu1 %v224_v33 }
  0xf8   :  { %1104 = vmatpush3.msra.mxu1 %v224_v33 }
  0xf9   :  { %1092 = vmatmul.mubr.msk.f32.gmra.mxu1 %vm243_vm1, %v1506_v28  ;;  %1105 = vmatprep.subr.mxu1 %v223_v32 }
  0xfa   :  { %1106 = vmatpush3.msra.mxu1 %v223_v32  ;;  %1094 = vmatprep.mubr.msk.f32.mxu1 %vm243_vm1, %v1511_v29 }
  0xfb   :  { %1194 = vmatprep.subr.mxu1 %v1332_v19 }
  0xfd   :  { %1095 = vmatmul.mubr.msk.f32.gmra.mxu1 %vm243_vm1, %v1520_v34 }
  0xfe   :  { %1107 = vmatprep.mubr.msk.f32.mxu1 %vm243_vm1, %v1392_v27  ;;  %v1545_v27 = vld [vmem:[%s1716_s2 + $0x18] sm:$0xff] }
 0x101   :  { %1108 = vmatmul.mubr.msk.f32.vlgmr.msra.gmra.mxu1 %vm243_vm1, %v1530_v36 }
 0x102   :  { %1202 = vmatpush3.msra.mxu1 %v1332_v19  ;;  %1110 = vmatprep.mubr.msk.f32.mxu1 %vm243_vm1, %v1535_v39  ;;  %v1563_v19 = vld [vmem:[%s1716_s2 + $0x28] sm:$0xff] }
 0x103   :  { %1195 = vmatprep.subr.mxu1 %v1339_v20 }
 0x104   :  { %1203 = vmatpush3.msra.mxu1 %v1339_v20  ;;  %v1569_v20 = vld [vmem:[%s1716_s2 + $0x30] sm:$0xff] }
 0x105   :  { %1111 = vmatmul.mubr.msk.f32.gmra.mxu1 %vm243_vm1, %v1545_v27  ;;  %1196 = vmatprep.subr.mxu1 %v1346_v21 }
 0x106   :  { %1204 = vmatpush3.msra.mxu1 %v1346_v21  ;;  %1113 = vmatprep.mubr.msk.f32.mxu1 %vm243_vm1, %v1551_v40  ;;  %v1581_v21 = vld [vmem:[%s1716_s2 + $0x38] sm:$0xff] }
 0x107   :  { %1197 = vmatprep.subr.mxu1 %v1353_v22 }
 0x108   :  { %1205 = vmatpush3.msra.mxu1 %v1353_v22 }
 0x109   :  { %1114 = vmatmul.mubr.msk.f32.gmra.mxu1 %vm243_vm1, %v1563_v19  ;;  %1198 = vmatprep.subr.mxu1 %v1360_v23 }
 0x10a   :  { %1206 = vmatpush3.msra.mxu1 %v1360_v23  ;;  %1116 = vmatprep.mubr.msk.f32.mxu1 %vm243_vm1, %v1569_v20 }
 0x10b   :  { %1199 = vmatprep.subr.mxu1 %v1367_v24 }
 0x10c   :  { %1207 = vmatpush3.msra.mxu1 %v1367_v24 }
 0x10d   :  { %1117 = vmatmul.mubr.msk.f32.gmra.mxu1 %vm243_vm1, %v1581_v21  ;;  %1200 = vmatprep.subr.mxu1 %v1373_v25 }
 0x10e   :  { %1208 = vmatpush3.msra.mxu1 %v1373_v25  ;;  %1144 = vmatprep.mubr.msk.f32.mxu1 %vm67_vm0, %v1295_v14 }
 0x10f   :  { %1201 = vmatprep.subr.mxu1 %v1381_v26 }
 0x110   :  { %1209 = vmatpush3.msra.mxu1 %v1381_v26 }
 0x111   :  { %1145 = vmatmul.mubr.msk.f32.vlgmr.msra.gmra.mxu1 %vm67_vm0, %v1303_v15  ;;  %v1137_v15 = vpop.f32.mrf.mxu0 }
 0x112   :  { %1147 = vmatprep.mubr.msk.f32.mxu1 %vm67_vm0, %v1308_v16  ;;  %v636_v8 = vmul.f32 %v1137_v15, %v1439_v50 }
 0x115   :  { %1148 = vmatmul.mubr.msk.f32.gmra.mxu1 %vm67_vm0, %v1317_v17 }
 0x116   :  { %1160 = vmatprep.mubr.msk.f32.mxu1 %vm243_vm1, %v1325_v18  ;;  %v586_v18 = vpop.f32.mrf.mxu0 }
 0x118   :  { %v1140_v54 = vpop.f32.mrf.mxu0 }
 0x119   :  { %v638_v33 = vmul.f32 %v1140_v54, %v1421_v42  ;;  %v653_v32 = vmul.f32 %v1140_v54, %v1409_v37 }
 0x11a   :  { %v596_v61 = vpop.f32.mrf.mxu0 }
 0x11c   :  { %v1143_v3 = vpop.f32.mrf.mxu0 }
 0x11e   :  { %v606_v5 = vpop.f32.mrf.mxu0 }
 0x11f   :  { %v639_v11 = vmul.f32 %v606_v5, %v1414_v38  ;;  %v654_v12 = vmul.f32 %v606_v5, %v1404_v35 }
 0x1b1   :  { %v1087_v22 = vpop.f32.mrf.mxu1 }
 0x1b3   :  { %v334_v23 = vpop.f32.mrf.mxu1 }
 0x1b5   :  { %v1090_v24 = vpop.f32.mrf.mxu1 }
 0x1b7   :  { %v344_v14 = vpop.f32.mrf.mxu1 }
 0x1b9   :  { %v1093_v25 = vpop.f32.mrf.mxu1 }
 0x1bb   :  { %v354_v41 = vpop.f32.mrf.mxu1 }
 0x1bd   :  { %v1096_v45 = vpop.f32.mrf.mxu1 }
 0x1bf   :  { %v364_v26 = vpop.f32.mrf.mxu1 }
 0x1c1   :  { %v1109_v46 = vpop.f32.mrf.mxu1 }
 0x1c2   :  { %v469_v47 = vadd.f32 %v1109_v46, %v1087_v22 }
 0x1c3   :  { %v463_v48 = vpop.f32.mrf.mxu1 }
 0x1c4   :  { %504 = vst.msk [vmem:[%s1719_s6 + $0x8] sm:$0xff] %vm502_vm2, %v469_v47  ;;  %v464_v16 = vadd.f32 %v463_v48, %v334_v23 }
 0x1c5   :  { %v1112_v17 = vpop.f32.mrf.mxu1 }
 0x1c6   :  { %503 = vst.msk [vmem:[%s1719_s6] sm:$0xff] %vm502_vm2, %v464_v16  ;;  %v479_v49 = vadd.f32 %v1112_v17, %v1090_v24  ;;  %v635_v17 = vmul.f32 %v586_v18, %v1451_v55 }
 0x1c7   :  { %v473_v52 = vpop.f32.mrf.mxu1 }
 0x1c8   :  { %506 = vst.msk [vmem:[%s1719_s6 + $0x18] sm:$0xff] %vm502_vm2, %v479_v49  ;;  %v474_v53 = vadd.f32 %v473_v52, %v344_v14 }
 0x1c9   :  { %v1115_v57 = vpop.f32.mrf.mxu1 }
 0x1ca   :  { %505 = vst.msk [vmem:[%s1719_s6 + $0x10] sm:$0xff] %vm502_vm2, %v474_v53  ;;  %v489_v58 = vadd.f32 %v1115_v57, %v1093_v25 }
 0x1cb   :  { %v483_v59 = vpop.f32.mrf.mxu1 }
 0x1cc   :  { %508 = vst.msk [vmem:[%s1719_s6 + $0x28] sm:$0xff] %vm502_vm2, %v489_v58  ;;  %v484_v60 = vadd.f32 %v483_v59, %v354_v41 }
 0x1cd   :  { %v1118_v62 = vpop.f32.mrf.mxu1 }
 0x1ce   :  { %507 = vst.msk [vmem:[%s1719_s6 + $0x20] sm:$0xff] %vm502_vm2, %v484_v60  ;;  %v499_v63 = vadd.f32 %v1118_v62, %v1096_v45 }
 0x1cf   :  { %v493_v0 = vpop.f32.mrf.mxu1 }
 0x1d0   :  { %510 = vst.msk [vmem:[%s1719_s6 + $0x38] sm:$0xff] %vm502_vm2, %v499_v63  ;;  %v494_v1 = vadd.f32 %v493_v0, %v364_v26  ;;  %v651_v26 = vmul.f32 %v1137_v15, %v1444_v51 }
 0x1d1   :  { %v1146_v4 = vpop.f32.mrf.mxu1 }
 0x1d2   :  { %509 = vst.msk [vmem:[%s1719_s6 + $0x30] sm:$0xff] %vm502_vm2, %v494_v1  ;;  %v642_v22 = vmul.f32 %v1146_v4, %v1431_v44  ;;  %v657_v23 = vmul.f32 %v1146_v4, %v1426_v43 }
 0x1d3   :  { %v616_v7 = vpop.f32.mrf.mxu1 }
 0x1d4   :  { %v641_v46 = vmul.f32 %v616_v7, %v1444_v51  ;;  %v656_v47 = vmul.f32 %v616_v7, %v1439_v50 }
 0x1d5   :  { %v1149_v9 = vpop.f32.mrf.mxu1 }
 0x1d6   :  { %v644_v13 = vmul.f32 %v1149_v9, %v1404_v35  ;;  %v659_v31 = vmul.f32 %v1149_v9, %v1414_v38  ;;  %v637_v35 = vmul.f32 %v596_v61, %v1426_v43  ;;  %v652_v38 = vmul.f32 %v596_v61, %v1431_v44 }
 0x1d7   :  { %v626_v24 = vpop.f32.mrf.mxu1  ;;  %v655_v43 = vmul.f32 %v1143_v3, %v1451_v55  ;;  %v646_v50 = vsub.f32 %v636_v8, %v641_v46  ;;  %v661_v51 = vadd.f32 %v656_v47, %v651_v26 }
 0x1d8   :  { %v649_v14 = vsub.f32 %v639_v11, %v644_v13  ;;  %v664_v25 = vadd.f32 %v659_v31, %v654_v12  ;;  %v643_v41 = vmul.f32 %v626_v24, %v1409_v37  ;;  %v658_v45 = vmul.f32 %v626_v24, %v1421_v42 }
 0x1d9   :  { %v650_v37 = vmul.f32 %v586_v18, %v1456_v56  ;;  %v640_v42 = vmul.f32 %v1143_v3, %v1456_v56  ;;  %v647_v15 = vsub.f32 %v637_v35, %v642_v22  ;;  %v662_v44 = vadd.f32 %v657_v23, %v652_v38 }
 0x1da   :  { %v648_v48 = vsub.f32 %v638_v33, %v643_v41  ;;  %v663_v16 = vadd.f32 %v658_v45, %v653_v32  ;;  %1150 = vmatprep.subr.mxu1 %v664_v25  ;;  %1172 = vmatprep.subr.mxu0 %v649_v14 }
 0x1db   :  { %1151 = vmatpush3.msra.mxu1 %v664_v25  ;;  %1173 = vmatpush3.msra.mxu0 %v649_v14  ;;  %v645_v49 = vsub.f32 %v635_v17, %v640_v42  ;;  %v660_v18 = vadd.f32 %v655_v43, %v650_v37 }
 0x1dc   :  { %1152 = vmatprep.subr.mxu1 %v663_v16  ;;  %1174 = vmatprep.subr.mxu0 %v648_v48 }
 0x1dd   :  { %1153 = vmatpush3.msra.mxu1 %v663_v16  ;;  %1175 = vmatpush3.msra.mxu0 %v648_v48 }
 0x1de   :  { %1154 = vmatprep.subr.mxu1 %v662_v44  ;;  %1176 = vmatprep.subr.mxu0 %v647_v15 }
 0x1df   :  { %1155 = vmatpush3.msra.mxu1 %v662_v44  ;;  %1177 = vmatpush3.msra.mxu0 %v647_v15 }
 0x1e0   :  { %1156 = vmatprep.subr.mxu1 %v661_v51  ;;  %1178 = vmatprep.subr.mxu0 %v646_v50 }
 0x1e1   :  { %1157 = vmatpush3.msra.mxu1 %v661_v51  ;;  %1179 = vmatpush3.msra.mxu0 %v646_v50 }
 0x1e2   :  { %1158 = vmatprep.subr.mxu1 %v660_v18  ;;  %1180 = vmatprep.subr.mxu0 %v645_v49 }
 0x1e3   :  { %1159 = vmatpush3.msra.mxu1 %v660_v18  ;;  %1181 = vmatpush3.msra.mxu0 %v645_v49 }
 0x1e4   :  { %1161 = vmatmul.mubr.msk.f32.vlgmr.msra.gmra.mxu1 %vm243_vm1, %v1469_v2  ;;  %1183 = vmatmul.mubr.msk.f32.vlgmr.msra.gmra.mxu0 %vm243_vm1, %v1530_v36 }
 0x1e5   :  { %1163 = vmatprep.mubr.msk.f32.mxu1 %vm243_vm1, %v1476_v6  ;;  %1185 = vmatprep.mubr.msk.f32.mxu0 %vm243_vm1, %v1535_v39 }
 0x1e8   :  { %1164 = vmatmul.mubr.msk.f32.gmra.mxu1 %vm243_vm1, %v1487_v10  ;;  %1186 = vmatmul.mubr.msk.f32.gmra.mxu0 %vm243_vm1, %v1545_v27 }
 0x1e9   :  { %1166 = vmatprep.mubr.msk.f32.mxu1 %vm243_vm1, %v1495_v30  ;;  %1188 = vmatprep.mubr.msk.f32.mxu0 %vm243_vm1, %v1551_v40 }
 0x1ec   :  { %1167 = vmatmul.mubr.msk.f32.gmra.mxu1 %vm243_vm1, %v1506_v28  ;;  %1189 = vmatmul.mubr.msk.f32.gmra.mxu0 %vm243_vm1, %v1563_v19 }
 0x1ed   :  { %1169 = vmatprep.mubr.msk.f32.mxu1 %vm243_vm1, %v1511_v29  ;;  %1191 = vmatprep.mubr.msk.f32.mxu0 %vm243_vm1, %v1569_v20 }
 0x1f0   :  { %1170 = vmatmul.mubr.msk.f32.gmra.mxu1 %vm243_vm1, %v1520_v34  ;;  %1192 = vmatmul.mubr.msk.f32.gmra.mxu0 %vm243_vm1, %v1581_v21 }
 0x2a4   :  { %v1162_v55 = vpop.f32.mrf.mxu1  ;;  %v1184_v56 = vpop.f32.mrf.mxu0 }
 0x2a5   :  { %v842_v2 = vadd.f32 %v1184_v56, %v1162_v55 }
 0x2a6   :  { %v731_v6 = vpop.f32.mrf.mxu1  ;;  %v836_v10 = vpop.f32.mrf.mxu0 }
 0x2a7   :  { %949 = vst.msk [vmem:[%s1719_s6 + $0x48] sm:$0xff] %vm502_vm2, %v842_v2  ;;  %v837_v30 = vadd.f32 %v836_v10, %v731_v6 }
 0x2a8   :  { %v1165_v28 = vpop.f32.mrf.mxu1  ;;  %v1187_v29 = vpop.f32.mrf.mxu0 }
 0x2a9   :  { %948 = vst.msk [vmem:[%s1719_s6 + $0x40] sm:$0xff] %vm502_vm2, %v837_v30  ;;  %v852_v34 = vadd.f32 %v1187_v29, %v1165_v28 }
 0x2aa   :  { %v741_v36 = vpop.f32.mrf.mxu1  ;;  %v846_v39 = vpop.f32.mrf.mxu0 }
 0x2ab   :  { %951 = vst.msk [vmem:[%s1719_s6 + $0x58] sm:$0xff] %vm502_vm2, %v852_v34  ;;  %v847_v27 = vadd.f32 %v846_v39, %v741_v36 }
 0x2ac   :  { %v1168_v40 = vpop.f32.mrf.mxu1  ;;  %v1190_v19 = vpop.f32.mrf.mxu0 }
 0x2ad   :  { %950 = vst.msk [vmem:[%s1719_s6 + $0x50] sm:$0xff] %vm502_vm2, %v847_v27  ;;  %v862_v20 = vadd.f32 %v1190_v19, %v1168_v40 }
 0x2ae   :  { %v751_v21 = vpop.f32.mrf.mxu1  ;;  %v856_v52 = vpop.f32.mrf.mxu0 }
 0x2af   :  { %953 = vst.msk [vmem:[%s1719_s6 + $0x68] sm:$0xff] %vm502_vm2, %v862_v20  ;;  %v857_v53 = vadd.f32 %v856_v52, %v751_v21 }
 0x2b0   :  { %v1171_v54 = vpop.f32.mrf.mxu1  ;;  %v1193_v57 = vpop.f32.mrf.mxu0 }
 0x2b1   :  { %952 = vst.msk [vmem:[%s1719_s6 + $0x60] sm:$0xff] %vm502_vm2, %v857_v53  ;;  %v872_v58 = vadd.f32 %v1193_v57, %v1171_v54 }
 0x2b2   :  { %v761_v59 = vpop.f32.mrf.mxu1  ;;  %v866_v60 = vpop.f32.mrf.mxu0 }
 0x2b3   :  { %955 = vst.msk [vmem:[%s1719_s6 + $0x78] sm:$0xff] %vm502_vm2, %v872_v58  ;;  %v867_v61 = vadd.f32 %v866_v60, %v761_v59 }
 0x2b5   :  { %954 = vst.msk [vmem:[%s1719_s6 + $0x70] sm:$0xff] %vm502_vm2, %v867_v61 }

</bundles_post_ra>
